<compile_context>
chip_gen: v7x
topology: tpu7x:2x2x1
jax: 0.10.0
libtpu: 0.0.40
codegen_flags: <defaults>
</compile_context>

<pallas_src>
import jax
import jax.numpy as jnp
from jax.experimental import pallas as pl
from jax.experimental.pallas import tpu as pltpu


# ------------------------------ fused kernel ------------------------------- #

def _fused_forward_kernel(x_ref, wf_ref, bf_ref, wfc_ref, bfc_ref,
                          x1_ref, pooled_ref):
    """Fused forward: global-avg-pool -> ReLU(pool@Wf+bf) -> @Wfc+bfc.

    Shapes (all f32, block == full array):
      x_ref:      [B, C, HW]   NCHW flattened over spatial (HW on lane axis)
      wf_ref:     [C, F]       feature-extractor projection weight
      bf_ref:     [1, F]
      wfc_ref:    [F, T]       integration_network.fc weight
      bfc_ref:    [1, T]
      x1_ref:     [B, T]
      pooled_ref: [B, C]
    """
    x = x_ref[...]                                   # [B, C, HW]

    # Global average pool over the spatial (lane) axis.
    pooled = jnp.mean(x, axis=2)                     # [B, C]

    # Single dense store of the pooled features (feature_list output).
    pooled_ref[...] = pooled

    # Feature-extractor projection + ReLU (feat stays in vregs).
    feat = jnp.maximum(
        jnp.dot(pooled, wf_ref[...], preferred_element_type=jnp.float32)
        + bf_ref[...],
        0.0)                                         # [B, F]

    # integration_network.fc
    x1_ref[...] = (jnp.dot(feat, wfc_ref[...],
                           preferred_element_type=jnp.float32)
                   + bfc_ref[...])                   # [B, T]


# -------------------------------- wrapper ----------------------------------- #

def integration_network_forward(x_nchw, params):
    """Matches integration_network.forward: returns (x1, feature_list, out_list)."""
    B, C, H, W = x_nchw.shape
    HW = H * W
    F = params["w_feat"].shape[1]
    T = params["w_fc"].shape[1]

    f32 = jnp.float32
    # Metadata-only reshape; no HBM copy.  (astype is a no-op for f32 inputs.)
    x = x_nchw.reshape(B, C, HW).astype(f32)
    wf = params["w_feat"].astype(f32)
    bf = params["b_feat"].astype(f32)
    wfc = params["w_fc"].astype(f32)
    bfc = params["b_fc"].astype(f32)

    flops = (B * C * HW            # pool
             + 2 * B * C * F       # pooled @ Wf
             + 2 * B * F * T)      # feat @ Wfc
    bytes_accessed = 4 * (x.size + wf.size + bf.size + wfc.size + bfc.size
                          + B * T + B * C)

    # TODO(synk): for non-toy shapes (large B / H*W): grid=(B/tm, HW/t_hw) with
    # HW as the last ("arbitrary") axis, f32 VMEM scratch pool-accumulator with
    # pl.when init at hw==0 and dots/stores at hw==last; mark the batch axis
    # "parallel" (uses v7x's 2 TensorCores); keep the x tile >= (8, 512) lanes
    # and <= ~8-12 MiB so double-buffering fits v7x's 64 MiB VMEM; stream x in
    # bf16 (accumulate the pool in f32 in-kernel) since the pool is HBM-bound.
    x1, pooled = pl.pallas_call(
        _fused_forward_kernel,
        grid=(1,),
        in_specs=[
            pl.BlockSpec((B, C, HW), lambda i: (0, 0, 0)),
            pl.BlockSpec((C, F), lambda i: (0, 0)),
            pl.BlockSpec((1, F), lambda i: (0, 0)),
            pl.BlockSpec((F, T), lambda i: (0, 0)),
            pl.BlockSpec((1, T), lambda i: (0, 0)),
        ],
        out_specs=[
            pl.BlockSpec((B, T), lambda i: (0, 0)),
            pl.BlockSpec((B, C), lambda i: (0, 0)),
        ],
        out_shape=(
            jax.ShapeDtypeStruct((B, T), f32),
            jax.ShapeDtypeStruct((B, C), f32),
        ),
        compiler_params=pltpu.CompilerParams(
            dimension_semantics=("arbitrary",)),
        cost_estimate=pl.CostEstimate(
            flops=flops, transcendentals=0, bytes_accessed=bytes_accessed),
    )(x, wf, bf, wfc, bfc)

    # mimic the synthetic feature extractor returning (x, feature_list)
    feature_list = [pooled]
    # self.fc_list is [] at __init__, so the out_list loop never runs.
    out_list = []
    return x1, feature_list, out_list


# --------------------------------- main ------------------------------------- #

if __name__ == "__main__":
    B, C, H, W = 2, 4, 16, 16
    IN_FEATURES = 32        # feature_extractor.fc.in_features
    TASK_NUM = 4

    key = jax.random.PRNGKey(0)
    k_x, k_wf, k_bf, k_w, k_b = jax.random.split(key, 5)

    x = jax.random.normal(k_x, (B, C, H, W), dtype=jnp.float32)
    params = {
        "w_feat": 0.1 * jax.random.normal(k_wf, (C, IN_FEATURES), jnp.float32),
        "b_feat": 0.1 * jax.random.normal(k_bf, (1, IN_FEATURES), jnp.float32),
        "w_fc":   0.1 * jax.random.normal(k_w, (IN_FEATURES, TASK_NUM), jnp.float32),
        "b_fc":   0.1 * jax.random.normal(k_b, (1, TASK_NUM), jnp.float32),
    }

    fwd = jax.jit(integration_network_forward)
    x1, feature_list, out_list = fwd(x, params)
    jax.block_until_ready(x1)
    jax.block_until_ready(feature_list[0])

    # pure-JAX reference check
    pooled_ref = jnp.mean(x.reshape(B, C, H * W), axis=2)
    feat_ref = jnp.maximum(pooled_ref @ params["w_feat"] + params["b_feat"], 0.0)
    x1_ref = feat_ref @ params["w_fc"] + params["b_fc"]

    assert x1.shape == (B, TASK_NUM)
    assert feature_list[0].shape == (B, C)
    assert jnp.allclose(x1, x1_ref, atol=1e-5, rtol=1e-5)
    assert jnp.allclose(feature_list[0], pooled_ref, atol=1e-5, rtol=1e-5)
    assert out_list == []   # fc_list empty at init, as in the PyTorch module

    print("KERNEL_OK")
</pallas_src>

<mosaic_0001>
module attributes {stable_mosaic.version = 11 : i64} {
  func.func @_fused_forward_kernel(%arg0: i32, %arg1: memref<2x4x256xf32, #tpu.memory_space<vmem>>, %arg2: memref<4x32xf32, #tpu.memory_space<vmem>>, %arg3: memref<1x32xf32, #tpu.memory_space<vmem>>, %arg4: memref<32x4xf32, #tpu.memory_space<vmem>>, %arg5: memref<1x4xf32, #tpu.memory_space<vmem>>, %arg6: memref<2x4xf32, #tpu.memory_space<vmem>>, %arg7: memref<2x4xf32, #tpu.memory_space<vmem>>) attributes {dimension_semantics = [#tpu.dimension_semantics<arbitrary>], iteration_bounds = array<i64: 1>, scalar_prefetch = 0 : i64, scratch_operands = 0 : i64, tpu.core_type = #tpu.core_type<tc>, window_params = [{pipeline_mode = #tpu.pipeline_mode<synchronous>, transform_indices = @transform_0, window_bounds = array<i64: 2, 4, 256>}, {pipeline_mode = #tpu.pipeline_mode<synchronous>, transform_indices = @transform_1, window_bounds = array<i64: 4, 32>}, {pipeline_mode = #tpu.pipeline_mode<synchronous>, transform_indices = @transform_2, window_bounds = array<i64: 1, 32>}, {pipeline_mode = #tpu.pipeline_mode<synchronous>, transform_indices = @transform_3, window_bounds = array<i64: 32, 4>}, {pipeline_mode = #tpu.pipeline_mode<synchronous>, transform_indices = @transform_4, window_bounds = array<i64: 1, 4>}, {pipeline_mode = #tpu.pipeline_mode<synchronous>, transform_indices = @transform_5, window_bounds = array<i64: 2, 4>}, {pipeline_mode = #tpu.pipeline_mode<synchronous>, transform_indices = @transform_6, window_bounds = array<i64: 2, 4>}]} {
    %c0 = arith.constant 0 : index
    %c0_0 = arith.constant 0 : index
    %c0_1 = arith.constant 0 : index
    %0 = vector.load %arg1[%c0, %c0_0, %c0_1] : memref<2x4x256xf32, #tpu.memory_space<vmem>>, vector<2x4x256xf32>
    %cst = arith.constant dense<0.000000e+00> : vector<2x4xf32>
    %1 = vector.multi_reduction <add>, %0, %cst [2] : vector<2x4x256xf32> to vector<2x4xf32>
    %cst_2 = arith.constant 2.560000e+02 : f32
    %2 = vector.broadcast %cst_2 : f32 to vector<2x4xf32>
    %3 = arith.divf %1, %2 : vector<2x4xf32>
    %c0_3 = arith.constant 0 : index
    %c0_4 = arith.constant 0 : index
    %4 = vector.load %arg7[%c0_3, %c0_4] : memref<2x4xf32, #tpu.memory_space<vmem>>, vector<2x4xf32>
    tpu.vector_store %arg7[%c0_3, %c0_4], %3 {strides = array<i32>} : memref<2x4xf32, #tpu.memory_space<vmem>>, vector<2x4xf32>,
    %c0_5 = arith.constant 0 : index
    %c0_6 = arith.constant 0 : index
    %5 = vector.load %arg2[%c0_5, %c0_6] : memref<4x32xf32, #tpu.memory_space<vmem>>, vector<4x32xf32>
    %cst_7 = arith.constant dense<0.000000e+00> : vector<2x32xf32>
    %6 = tpu.matmul %3, %5, %cst_7 {dimension_numbers = #tpu.dot_dimension_numbers<[1], [0], [0], [1], [0, 0, 1, 1], [], []>} : vector<2x4xf32>, vector<4x32xf32>, vector<2x32xf32> -> vector<2x32xf32>
    %c0_8 = arith.constant 0 : index
    %c0_9 = arith.constant 0 : index
    %7 = vector.load %arg3[%c0_8, %c0_9] : memref<1x32xf32, #tpu.memory_space<vmem>>, vector<1x32xf32>
    %8 = vector.broadcast %7 : vector<1x32xf32> to vector<2x32xf32>
    %9 = arith.addf %6, %8 : vector<2x32xf32>
    %cst_10 = arith.constant 0.000000e+00 : f32
    %10 = vector.broadcast %cst_10 : f32 to vector<2x32xf32>
    %11 = arith.maximumf %9, %10 : vector<2x32xf32>
    %c0_11 = arith.constant 0 : index
    %c0_12 = arith.constant 0 : index
    %12 = vector.load %arg4[%c0_11, %c0_12] : memref<32x4xf32, #tpu.memory_space<vmem>>, vector<32x4xf32>
    %cst_13 = arith.constant dense<0.000000e+00> : vector<2x4xf32>
    %13 = tpu.matmul %11, %12, %cst_13 {dimension_numbers = #tpu.dot_dimension_numbers<[1], [0], [0], [1], [0, 0, 1, 1], [], []>} : vector<2x32xf32>, vector<32x4xf32>, vector<2x4xf32> -> vector<2x4xf32>
    %c0_14 = arith.constant 0 : index
    %c0_15 = arith.constant 0 : index
    %14 = vector.load %arg5[%c0_14, %c0_15] : memref<1x4xf32, #tpu.memory_space<vmem>>, vector<1x4xf32>
    %15 = vector.broadcast %14 : vector<1x4xf32> to vector<2x4xf32>
    %16 = arith.addf %13, %15 : vector<2x4xf32>
    %c0_16 = arith.constant 0 : index
    %c0_17 = arith.constant 0 : index
    %17 = vector.load %arg6[%c0_16, %c0_17] : memref<2x4xf32, #tpu.memory_space<vmem>>, vector<2x4xf32>
    tpu.vector_store %arg6[%c0_16, %c0_17], %16 {strides = array<i32>} : memref<2x4xf32, #tpu.memory_space<vmem>>, vector<2x4xf32>,
    return
  }
  func.func @transform_0(%arg0: i32) -> (i32, i32, i32) {
    %c0_i32 = arith.constant 0 : i32
    %c0_i32_0 = arith.constant 0 : i32
    %c0_i32_1 = arith.constant 0 : i32
    %c0_i32_2 = arith.constant 0 : i32
    return %c0_i32, %c0_i32_0, %c0_i32_1 : i32, i32, i32
  }
  func.func @transform_1(%arg0: i32) -> (i32, i32) {
    %c0_i32 = arith.constant 0 : i32
    %c0_i32_0 = arith.constant 0 : i32
    %c0_i32_1 = arith.constant 0 : i32
    return %c0_i32, %c0_i32_0 : i32, i32
  }
  func.func @transform_2(%arg0: i32) -> (i32, i32) {
    %c0_i32 = arith.constant 0 : i32
    %c0_i32_0 = arith.constant 0 : i32
    %c0_i32_1 = arith.constant 0 : i32
    return %c0_i32, %c0_i32_0 : i32, i32
  }
  func.func @transform_3(%arg0: i32) -> (i32, i32) {
    %c0_i32 = arith.constant 0 : i32
    %c0_i32_0 = arith.constant 0 : i32
    %c0_i32_1 = arith.constant 0 : i32
    return %c0_i32, %c0_i32_0 : i32, i32
  }
  func.func @transform_4(%arg0: i32) -> (i32, i32) {
    %c0_i32 = arith.constant 0 : i32
    %c0_i32_0 = arith.constant 0 : i32
    %c0_i32_1 = arith.constant 0 : i32
    return %c0_i32, %c0_i32_0 : i32, i32
  }
  func.func @transform_5(%arg0: i32) -> (i32, i32) {
    %c0_i32 = arith.constant 0 : i32
    %c0_i32_0 = arith.constant 0 : i32
    %c0_i32_1 = arith.constant 0 : i32
    return %c0_i32, %c0_i32_0 : i32, i32
  }
  func.func @transform_6(%arg0: i32) -> (i32, i32) {
    %c0_i32 = arith.constant 0 : i32
    %c0_i32_0 = arith.constant 0 : i32
    %c0_i32_1 = arith.constant 0 : i32
    return %c0_i32, %c0_i32_0 : i32, i32
  }
}

</mosaic_0001>

<bundles_post_ra>
// kernel: integration_network_forward.1
= control target key start
LH: loop header
LB: loop body
LE: loop exit
PB: predicated region body
PF: predicated region fallthrough
CT: control target
= control target key end

     0   :  { %12 = vsyncpa [#allocation3], 0  ;;  %vm32_vm0 = vcmask 1043456   ;;  %s449_s0 = inlined_call_operand.vmem [shape: f32[2,4,256], index: 0, kind: input, shape index: {}]   ;;  %s450_s1 = inlined_call_operand.vmem [shape: f32[4,32], index: 1, kind: input, shape index: {}]   ;;  %s451_s2 = inlined_call_operand.vmem [shape: f32[1,32], index: 2, kind: input, shape index: {}]   ;;  %s452_s3 = inlined_call_operand.vmem [shape: f32[32,4], index: 3, kind: input, shape index: {}]   ;;  %s453_s4 = inlined_call_operand.vmem [shape: f32[1,4], index: 4, kind: input, shape index: {}]   ;;  %s454_s5 = inlined_call_operand.hbm [shape: f32[2,4], index: 5, kind: output, shape index: {0}]   ;;  %s455_s6 = inlined_call_operand.hbm [shape: f32[2,4], index: 6, kind: output, shape index: {1}]  }
   0x1   :  { %v24_v0 = vld [vmem:[%s449_s0] sm:$0xff]  ;;  %v25_v1 = vld [vmem:[%s449_s0 + $0x8] sm:$0xff] }
   0x2   :  { %13 = vsyncpa [#allocation5], 0  ;;  %v28_v2 = vcombine.high %v24_v0, %v24_v0  ;;  %v33_v3 = vsel %vm32_vm0, %v24_v0, 0.0  ;;  %v29_v4 = vcombine.high %v25_v1, %v25_v1  ;;  %v38_v6 = vsel %vm32_vm0, %v25_v1, 0.0  ;;  %v63_v10 = vld [vmem:[%s450_s1] sm:$0xf] }
   0x3   :  { %v351_v11 = vmov 0.0   ;;  %vm352_vm1 = vmmov 0   ;;  %v148_v12 = vld [vmem:[%s452_s3] sm:$0xff]  ;;  %v149_v13 = vld [vmem:[%s452_s3 + $0x8] sm:$0xff]  ;;  %v353_v14 = vmov 0.0|0.0   ;;  %v48_v16 = vlaneseq  ;;  %v150_v27 = vld [vmem:[%s452_s3 + $0x10] sm:$0xff] }
   0x4   :  { %v34_v5 = vsel %vm32_vm0, %v28_v2, 0.0  ;;  %v39_v7 = vsel %vm32_vm0, %v29_v4, 0.0  ;;  %274 = vmatprep.subr.mxu0 %v351_v11  ;;  %276 = vmatprep.mubr.msk.f32.mxu0 %vm352_vm1, %v351_v11  ;;  %v291_v15 = vpack.c.bf16 %v149_v13, %v148_v12  ;;  %vm58_vm2 = vcmask 1041409   ;;  %v151_v28 = vld [vmem:[%s452_s3 + $0x18] sm:$0xff]  ;;  %v262_v30 = vld [vmem:[%s451_s2] ss:$0 sm:$0xff] }
   0x5   :  { %v35_v8 = vadd.f32 %v34_v5, %v33_v3  ;;  %v40_v9 = vadd.f32 %v39_v7, %v38_v6  ;;  %275 = vmatpush3.msk.msra.mxu0 %vm32_vm0, %v63_v10  ;;  %287 = vmatprep.mubr.msk.f32.mxu1 %vm352_vm1, %v351_v11  ;;  %v49_v17 = vand.u32 127, %v48_v16  ;;  %v51_v18 = vshrl.u32 %v48_v16, 7  ;;  %s354_s11 = smov [#allocation4]  }
   0x6   :  { %290 = vmatprep.subr.bf16.mxu1 %v353_v14  ;;  %vm71_vm3 = vcmask 31744   ;;  %vm61_vm4 = vcmask 25600   ;;  %v294_v29 = vpack.c.bf16 %v151_v28, %v150_v27  ;;  %vm159_vm5 = vcmask 261120   ;;  %s250_s12 = sshll.u32 %s354_s11, 4  ;;  %s251_s12 = int_to_ptr.vmem [resolvable:$true] %s250_s12 }
   0x7   :  { %36 = vadd.xlane.f32.xlu0 %v35_v8  ;;  %292 = vmatpush3.bf16.msra.mxu1 %v291_v15  ;;  %v52_v20 = vsub.s32 %v49_v17, %v51_v18  ;;  %s303_s13 = scalar_lea.vmem %s251_s12, 32  ;;  %p308_p1 = scmp.lt.s32.totalorder %s251_s12, %s251_s12 }
   0x8   :  { %293 = vmatprep.subr.bf16.mxu1 %v353_v14  ;;  %p304_p0 = scmp.ne.s32.totalorder %s251_s12, %s303_s13  ;;  %p309_p2 = scmp.lt.s32.totalorder %s303_s13, %s303_s13 }
   0xa   :  { %p310_p3 = por %p309_p2, %p308_p1 }
   0xb   :  { %41 = vadd.xlane.f32.xlu0 %v40_v9  ;;  %295 = vmatpush3.bf16.msra.mxu1 %v294_v29 }
   0xc   :  { %p311_p4 = pnand %p310_p3, %p304_p0 }
  0x94   :  { %v37_v19 = vpop.xlane.xlu0 %36 }
  0x95   :  { %v44_v21 = vmul.f32 0.00390625, %v37_v19 }
  0x97   :  { %v53_v24 = vrot.slane %v44_v21, %v52_v20 }
  0x98   :  { %v42_v22 = vpop.xlane.xlu0 %41 }
  0x99   :  { %v45_v23 = vmul.f32 0.00390625, %v42_v22 }
  0x9b   :  { %v57_v25 = vrot.slane %v45_v23, %v52_v20 }
  0x9d   :  { %v59_v26 = vsel %vm58_vm2, %v57_v25, %v53_v24 }
  0x9e   :  { %277 = vmatmul.mubr.msk.f32.vlgmr.msra.gmra.mrb[0].mxu0 %vm71_vm3, %v59_v26  ;;  %62 = vst.msk [vmem:[#allocation4] sm:$0x3] %vm61_vm4, %v59_v26 }
 0x171   :  { %v143_v31 = vpop.f32.mrb[0].mxu0 }
 0x172   :  { %v144_v32 = vadd.f32 %v262_v30, %v143_v31  ;;  %v278_v33 = vpop.f32.mrb[1].mxu0 }
 0x174   :  { %v147_v34 = vmax.f32 %v144_v32, 0.0 }
 0x176   :  { %288 = vmatmul.mubr.msk.f32.vlgmr.msra.gmra.mrb[0].mxu1 %vm159_vm5, %v147_v34 }
 0x177   :  { %314 = shalt.err (!%p311_p4)
}
 0x178   :  { %s315_s2 = scalar_lea.hbm %s455_s6, 32 }
 0x179   :  { %p316_p5 = scmp.ne.s32.totalorder %s455_s6, %s315_s2  ;;  %p319_p6 = scmp.lt.u32.totalorder %s315_s2, %s455_s6 }
 0x17b   :  { %p321_p7 = pnand %p319_p6, %p316_p5 }
 0x17d   :  { %324 = shalt.err (!%p321_p7)
}
 0x17e   :  { %253 = dma.vmem_to_hbm [thread:$0]  %s251_s12, 32, %s455_s6, [#allocation5]   ;;  %v265_v35 = vld [vmem:[%s453_s4] ss:$0 sm:$0xff] }
 0x17f   :  { %s355_s23 = smov [#allocation2]  }
 0x180   :  { %s240_s24 = sshll.u32 %s355_s23, 4  ;;  %s241_s24 = int_to_ptr.vmem [resolvable:$true] %s240_s24 }
 0x181   :  { %s325_s25 = scalar_lea.vmem %s241_s24, 32  ;;  %p330_p9 = scmp.lt.s32.totalorder %s241_s24, %s241_s24 }
 0x182   :  { %p326_p8 = scmp.ne.s32.totalorder %s241_s24, %s325_s25  ;;  %p331_p10 = scmp.lt.s32.totalorder %s325_s25, %s325_s25 }
 0x184   :  { %p332_p11 = por %p331_p10, %p330_p9 }
 0x186   :  { %p333_p12 = pnand %p332_p11, %p326_p8 }
 0x249   :  { %v229_v36 = vpop.f32.mrb[0].mxu1 }
 0x24a   :  { %v230_v37 = vadd.f32 %v265_v35, %v229_v36  ;;  %v289_v38 = vpop.f32.mrb[1].mxu1 }
 0x24c   :  { %233 = vst.msk [vmem:[#allocation2] sm:$0x3] %vm61_vm4, %v230_v37 }
 0x24d   :  { %336 = shalt.err (!%p333_p12)
}
 0x24e   :  { %s337_s0 = scalar_lea.hbm %s454_s5, 32 }
 0x24f   :  { %p338_p13 = scmp.ne.s32.totalorder %s454_s5, %s337_s0  ;;  %p341_p0 = scmp.lt.u32.totalorder %s337_s0, %s454_s5 }
 0x251   :  { %p343_p1 = pnand %p341_p0, %p338_p13 }
 0x253   :  { %346 = shalt.err (!%p343_p1)
}
 0x254   :  { %243 = dma.vmem_to_hbm [thread:$0]  %s241_s24, 32, %s454_s5, [#allocation3]  }
 0x255   :  { %347 = dma.done.wait [#allocation3], 32  }
 0x256   :  { %348 = vsyncadd [#allocation3], 4294967264 }
 0x257   :  { %349 = dma.done.wait [#allocation5], 32  }
 0x258   :  { %350 = vsyncadd [#allocation5], 4294967264 }
 0x259   :  { %260 = vsyncpa [#allocation3], 1 }
 0x25a   :  { %261 = vsyncpa [#allocation5], 1 }

</bundles_post_ra>
